<compile_context>
chip_gen: v7x
topology: tpu7x:2x2x1
jax: 0.10.0
libtpu: 0.0.40
codegen_flags: <defaults>
</compile_context>

<pallas_src>
import functools

import jax
import jax.numpy as jnp
from jax import lax
from jax.experimental import pallas as pl
from jax.experimental.pallas import tpu as pltpu


def _softplus_thr10(x):
    # PyTorch nn.Softplus(beta=1, threshold=10): linear for x > threshold.
    return jnp.where(x > 10.0, x, jnp.log1p(jnp.exp(jnp.minimum(x, 10.0))))


def _stochastic_pool_kernel(x_ref, sel_ref, o_ref, *, kh, W):
    """x_ref:   (tm, kh*W)  row m holds the kh input rows of output row m,
                            laid out [input row 0 | input row 1 | ...] on
                            lanes (a free reshape of NCHW -- no HBM transpose).
       sel_ref: (W, Wo)     0/1 kw-selection matrix: lane c contributes to
                            output column c // kw.
       o_ref:   (tm, Wo)

    Softplus runs lane-dense on the VPU/EUP.  Stage A sums the kh patch rows
    with lane-aligned VPU adds; Stage B does the kw compaction as one small
    matmul per operand on the otherwise-idle MXU (HIGHEST precision keeps the
    sums f32-exact for the 1e-5 check)."""
    x = x_ref[...].astype(jnp.float32)
    w = _softplus_thr10(x)
    p = x * w

    # Stage A: (tm, kh*W) -> (tm, W) via static, contiguous lane slices.
    num_w = p[:, 0:W]
    den_w = w[:, 0:W]
    for r in range(1, kh):
        num_w = num_w + p[:, r * W:(r + 1) * W]
        den_w = den_w + w[:, r * W:(r + 1) * W]

    # Stage B: kw-wise sum + lane compaction on the MXU.
    sel = sel_ref[...]
    num = jnp.dot(num_w, sel, preferred_element_type=jnp.float32,
                  precision=lax.Precision.HIGHEST)
    den = jnp.dot(den_w, sel, preferred_element_type=jnp.float32,
                  precision=lax.Precision.HIGHEST)

    # NOTE: num * pl.reciprocal(den, approx=True) would move the divide to the
    # EUP but adds ~2^-12 relative error; kept exact to hold the 1e-5 check.
    # Matches PyTorch (eps=0 unused): an all-very-negative patch is 0/0 -> NaN
    # in both implementations.
    o_ref[...] = (num / den).astype(o_ref.dtype)


def _auto_block_rows(n_rows, row_bytes, target_bytes=2 * 1024 * 1024,
                     max_rows=2048):
    """~2 MiB input tile (HBM-bound sweet spot; with double buffering this
    stays far below v7x's 64 MiB VMEM), a multiple of 8 sublanes, or the whole
    array if it is smaller than that."""
    rows = int(target_bytes // max(1, row_bytes))
    rows = max(8, min(rows, max_rows) // 8 * 8)
    return n_rows if rows >= n_rows else rows


def stochastic_pool_eval(x, ksize=(2, 2), block_rows=None):
    """Eval-mode (weightedAverage) stochastic pooling. x: (B, C, H, W) NCHW."""
    B, C, H, W = x.shape
    kh, kw = (ksize, ksize) if isinstance(ksize, int) else tuple(ksize)
    Ho, Wo = H // kh, W // kw
    Mo = B * C * Ho          # output rows
    khW = kh * W             # lanes per output row (its kh input rows)

    # Free, contiguous reshape (no extra HBM read/write): output row
    # m = (b, c, ho) owns input rows [ho*kh, ho*kh + kh) of plane (b, c).
    xr = x.reshape(Mo, khW)

    # 0/1 selection matrix summing kw adjacent lanes: input column c
    # contributes to output column c // kw.
    col = jnp.arange(W, dtype=jnp.int32)
    sel = (col[:, None] // kw == jnp.arange(Wo, dtype=jnp.int32)[None, :])
    sel = sel.astype(jnp.float32)

    if block_rows is None:
        tm = _auto_block_rows(Mo, khW * x.dtype.itemsize)
    else:
        tm = max(8, int(block_rows) // 8 * 8)
        tm = Mo if tm >= Mo else tm
    grid = (pl.cdiv(Mo, tm),)

    n_in = B * C * H * W
    cost = pl.CostEstimate(
        # elementwise softplus/mul/add (VPU) + two (Mo,W)@(W,Wo) matmuls (MXU)
        flops=int(8 * n_in + 2 * 2 * Mo * W * Wo),
        transcendentals=int(2 * n_in),             # exp + log1p per element
        bytes_accessed=int((n_in + Mo * Wo) * x.dtype.itemsize + W * Wo * 4),
    )

    kernel = functools.partial(_stochastic_pool_kernel, kh=kh, W=W)

    out = pl.pallas_call(
        kernel,
        out_shape=jax.ShapeDtypeStruct((Mo, Wo), x.dtype),
        grid=grid,
        in_specs=[
            pl.BlockSpec((tm, khW), lambda i: (i, 0)),
            # Constant block index -> stays VMEM-resident across grid steps.
            pl.BlockSpec((W, Wo), lambda i: (0, 0)),
        ],
        # Output last dim is Wo (< 128 for small maps -> masked stores), but
        # output traffic is only 1/(kh*kw) of the lane-dense input path, so it
        # is not the binding cost; restructuring to (B*C, Ho*Wo) would need a
        # riskier in-kernel sublane->lane relayout.
        out_specs=pl.BlockSpec((tm, Wo), lambda i: (i, 0)),
        compiler_params=pltpu.CompilerParams(
            # Independent output-row tiles: double-buffered DMA/compute overlap
            # and shardable across both TensorCores on v7x.
            dimension_semantics=("parallel",)),
        cost_estimate=cost,
    )(xr, sel)

    # (Mo, Wo) is byte-identical to (B, C, Ho, Wo); this reshape is free.
    return out.reshape(B, C, Ho, Wo)


def _reference(x, ksize=(2, 2)):
    """Pure-JAX reference mirroring the PyTorch weightedAverage path."""
    B, C, H, W = x.shape
    kh, kw = (ksize, ksize) if isinstance(ksize, int) else tuple(ksize)
    Ho, Wo = H // kh, W // kw
    xr = x.astype(jnp.float32).reshape(B, C, Ho, kh, Wo, kw)
    xr = jnp.transpose(xr, (0, 1, 2, 4, 3, 5)).reshape(B, C, Ho, Wo, kh * kw)
    w = _softplus_thr10(xr)
    return (jnp.sum(xr * w, axis=-1) / jnp.sum(w, axis=-1)).astype(x.dtype)


if __name__ == "__main__":
    key = jax.random.PRNGKey(0)

    # 1) canonical small shape, auto tile size.
    B, C, H, W = 2, 4, 16, 16
    x = jax.random.normal(key, (B, C, H, W), dtype=jnp.float32)
    out = jax.block_until_ready(stochastic_pool_eval(x, ksize=(2, 2)))
    ref = _reference(x, ksize=(2, 2))
    assert out.shape == (B, C, H // 2, W // 2), out.shape
    assert jnp.allclose(out, ref, atol=1e-5, rtol=1e-5), "f32 mismatch (auto)"

    # 2) same input, forced small tile -> multi-step pipelined grid.
    out_t = jax.block_until_ready(
        stochastic_pool_eval(x, ksize=(2, 2), block_rows=16))
    assert jnp.allclose(out_t, ref, atol=1e-5, rtol=1e-5), "f32 mismatch (tiled)"

    # 3) bf16 input: kernel computes in f32, output keeps the input dtype.
    xb = jax.random.normal(jax.random.PRNGKey(1), (2, 8, 32, 32),
                           dtype=jnp.bfloat16)
    out_b = jax.block_until_ready(stochastic_pool_eval(xb, ksize=(2, 2)))
    ref_b = _reference(xb, ksize=(2, 2))
    assert out_b.dtype == jnp.bfloat16
    assert jnp.allclose(out_b.astype(jnp.float32), ref_b.astype(jnp.float32),
                        atol=3e-2, rtol=3e-2), "bf16 mismatch"

    # 4) non-square kernel + rectangular image (exercises kh != kw paths).
    xr_ = jax.random.normal(jax.random.PRNGKey(2), (2, 4, 24, 32),
                            dtype=jnp.float32)
    out_r = jax.block_until_ready(stochastic_pool_eval(xr_, ksize=(3, 2)))
    ref_r = _reference(xr_, ksize=(3, 2))
    assert out_r.shape == (2, 4, 8, 16), out_r.shape
    assert jnp.allclose(out_r, ref_r, atol=1e-5, rtol=1e-5), "rect mismatch"

    print("KERNEL_OK")
</pallas_src>

<mosaic_0001>
module attributes {stable_mosaic.version = 11 : i64} {
  func.func @_stochastic_pool_kernel(%arg0: i32, %arg1: memref<64x32xf32, #tpu.memory_space<vmem>>, %arg2: memref<16x8xf32, #tpu.memory_space<vmem>>, %arg3: memref<64x8xf32, #tpu.memory_space<vmem>>) attributes {dimension_semantics = [#tpu.dimension_semantics<parallel>], iteration_bounds = array<i64: 1>, scalar_prefetch = 0 : i64, scratch_operands = 0 : i64, tpu.core_type = #tpu.core_type<tc>, window_params = [{transform_indices = @transform_0, window_bounds = array<i64: 64, 32>}, {pipeline_mode = #tpu.pipeline_mode<synchronous>, transform_indices = @transform_1, window_bounds = array<i64: 16, 8>}, {transform_indices = @transform_2, window_bounds = array<i64: 64, 8>}]} {
    %c0 = arith.constant 0 : index
    %c0_0 = arith.constant 0 : index
    %0 = vector.load %arg1[%c0, %c0_0] : memref<64x32xf32, #tpu.memory_space<vmem>>, vector<64x32xf32>
    %cst = arith.constant 1.000000e+01 : f32
    %1 = vector.broadcast %cst : f32 to vector<64x32xf32>
    %2 = arith.cmpf ogt, %0, %1 : vector<64x32xf32>
    %cst_1 = arith.constant 1.000000e+01 : f32
    %3 = vector.broadcast %cst_1 : f32 to vector<64x32xf32>
    %4 = arith.minimumf %0, %3 : vector<64x32xf32>
    %5 = math.exp %4 : vector<64x32xf32>
    %6 = math.log1p %5 : vector<64x32xf32>
    %7 = arith.select %2, %0, %6 : vector<64x32xi1>, vector<64x32xf32>
    %8 = arith.mulf %0, %7 : vector<64x32xf32>
    %9 = vector.extract_strided_slice %8 {offsets = [0, 0], sizes = [64, 16], strides = [1, 1]} : vector<64x32xf32> to vector<64x16xf32>
    %10 = vector.extract_strided_slice %7 {offsets = [0, 0], sizes = [64, 16], strides = [1, 1]} : vector<64x32xf32> to vector<64x16xf32>
    %11 = vector.extract_strided_slice %8 {offsets = [0, 16], sizes = [64, 16], strides = [1, 1]} : vector<64x32xf32> to vector<64x16xf32>
    %12 = arith.addf %9, %11 : vector<64x16xf32>
    %13 = vector.extract_strided_slice %7 {offsets = [0, 16], sizes = [64, 16], strides = [1, 1]} : vector<64x32xf32> to vector<64x16xf32>
    %14 = arith.addf %10, %13 : vector<64x16xf32>
    %c0_2 = arith.constant 0 : index
    %c0_3 = arith.constant 0 : index
    %15 = vector.load %arg2[%c0_2, %c0_3] : memref<16x8xf32, #tpu.memory_space<vmem>>, vector<16x8xf32>
    %cst_4 = arith.constant dense<0.000000e+00> : vector<64x8xf32>
    %16 = tpu.matmul %12, %15, %cst_4 {dimension_numbers = #tpu.dot_dimension_numbers<[1], [0], [0], [1], [0, 0, 1, 1], [], []>, precision = #tpu.contract_precision<fp32>} : vector<64x16xf32>, vector<16x8xf32>, vector<64x8xf32> -> vector<64x8xf32>
    %cst_5 = arith.constant dense<0.000000e+00> : vector<64x8xf32>
    %17 = tpu.matmul %14, %15, %cst_5 {dimension_numbers = #tpu.dot_dimension_numbers<[1], [0], [0], [1], [0, 0, 1, 1], [], []>, precision = #tpu.contract_precision<fp32>} : vector<64x16xf32>, vector<16x8xf32>, vector<64x8xf32> -> vector<64x8xf32>
    %18 = arith.divf %16, %17 : vector<64x8xf32>
    %c0_6 = arith.constant 0 : index
    %c0_7 = arith.constant 0 : index
    %19 = vector.load %arg3[%c0_6, %c0_7] : memref<64x8xf32, #tpu.memory_space<vmem>>, vector<64x8xf32>
    tpu.vector_store %arg3[%c0_6, %c0_7], %18 {strides = array<i32>} : memref<64x8xf32, #tpu.memory_space<vmem>>, vector<64x8xf32>,
    return
  }
  func.func @transform_0(%arg0: i32) -> (i32, i32) {
    %c0_i32 = arith.constant 0 : i32
    %c0_i32_0 = arith.constant 0 : i32
    return %arg0, %c0_i32 : i32, i32
  }
  func.func @transform_1(%arg0: i32) -> (i32, i32) {
    %c0_i32 = arith.constant 0 : i32
    %c0_i32_0 = arith.constant 0 : i32
    %c0_i32_1 = arith.constant 0 : i32
    return %c0_i32, %c0_i32_0 : i32, i32
  }
  func.func @transform_2(%arg0: i32) -> (i32, i32) {
    %c0_i32 = arith.constant 0 : i32
    %c0_i32_0 = arith.constant 0 : i32
    return %arg0, %c0_i32 : i32, i32
  }
}

</mosaic_0001>

<bundles_post_ra>
// kernel: tpu_custom_call.1
= control target key start
LH: loop header
LB: loop body
LE: loop exit
PB: predicated region body
PF: predicated region fallthrough
CT: control target
= control target key end

     0   :  { %s2886_s0 = inlined_call_operand.vmem [shape: f32[64,32], index: 0, kind: input, shape index: {}]   ;;  %s2887_s1 = inlined_call_operand.vmem [shape: f32[16,8], index: 1, kind: input, shape index: {}]   ;;  %s2888_s2 = inlined_call_operand.vmem [shape: f32[64,8], index: 2, kind: output, shape index: {}]  }
   0x1   :  { %v2327_v0 = vld [vmem:[%s2886_s0 + $0x10] sm:$0xff]  ;;  %v2332_v1 = vld [vmem:[%s2886_s0] sm:$0xff]  ;;  %v2337_v2 = vld [vmem:[%s2886_s0 + $0x18] sm:$0xff] }
   0x2   :  { %v29_v3 = vmin.f32 %v2327_v0, 10.0  ;;  %v27_v4 = vmin.f32 %v2332_v1, 10.0  ;;  %v2344_v5 = vld [vmem:[%s2886_s0 + $0x8] sm:$0xff]  ;;  %v30_v7 = vmin.f32 %v2337_v2, 10.0  ;;  %v2356_v9 = vld [vmem:[%s2886_s0 + $0x20] sm:$0xff]  ;;  %v2361_v10 = vld [vmem:[%s2886_s0 + $0x38] sm:$0xff] }
   0x3   :  { %v2349_v6 = vld [vmem:[%s2886_s0 + $0x28] sm:$0xff]  ;;  %v28_v8 = vmin.f32 %v2344_v5, 10.0  ;;  %v31_v16 = vmin.f32 %v2356_v9, 10.0  ;;  %v34_v18 = vmin.f32 %v2361_v10, 10.0  ;;  %v2369_v19 = vld [vmem:[%s2886_s0 + $0x30] sm:$0xff]  ;;  %vm21_vm0 = vcmp.gt.f32.partialorder %v2327_v0, 10.0 }
   0x4   :  { %v39_v11 = vmul.f32 1.442695, %v29_v3  ;;  %v35_v12 = vmul.f32 1.442695, %v27_v4  ;;  %v32_v13 = vmin.f32 %v2349_v6, 10.0  ;;  %v33_v20 = vmin.f32 %v2369_v19, 10.0 }
   0x5   :  { %v41_v14 = vmul.f32 1.442695, %v30_v7  ;;  %v37_v15 = vmul.f32 1.442695, %v28_v8  ;;  %v43_v21 = vmul.f32 1.442695, %v31_v16 }
   0x6   :  { %2260 = vpow2.f32 %v39_v11  ;;  %v45_v17 = vmul.f32 1.442695, %v32_v13  ;;  %v49_v22 = vmul.f32 1.442695, %v34_v18  ;;  %v47_v23 = vmul.f32 1.442695, %v33_v20 }
   0x7   :  { %2262 = vpow2.f32 %v35_v12  ;;  %vm19_vm1 = vcmp.gt.f32.partialorder %v2332_v1, 10.0  ;;  %vm22_vm2 = vcmp.gt.f32.partialorder %v2337_v2, 10.0  ;;  %vm20_vm4 = vcmp.gt.f32.partialorder %v2344_v5, 10.0  ;;  %v219_v11 = vld [vmem:[%s2887_s1] sm:$0xff]  ;;  %v220_v12 = vld [vmem:[%s2887_s1 + $0x8] sm:$0xff]  ;;  %s2308_s1 = smov 112  }
   0x8   :  { %2264 = vpow2.f32 %v41_v14  ;;  %vm24_vm7 = vcmp.gt.f32.partialorder %v2349_v6, 10.0  ;;  %vm23_vm11 = vcmp.gt.f32.partialorder %v2356_v9, 10.0  ;;  %vm26_vm13 = vcmp.gt.f32.partialorder %v2361_v10, 10.0 }
   0x9   :  { %2266 = vpow2.f32 %v37_v15  ;;  %vm25_vm14 = vcmp.gt.f32.partialorder %v2369_v19, 10.0 }
   0xa   :  { %2268 = vpow2.f32 %v45_v17 }
   0xb   :  { %2270 = vpow2.f32 %v43_v21  ;;  %v247_v21 = vand.u32 4294901760, %v219_v11 }
   0xc   :  { %2272 = vpow2.f32 %v49_v22  ;;  %v250_v22 = vand.u32 4294901760, %v220_v12 }
   0xd   :  { %2274 = vpow2.f32 %v47_v23 }
  0x10   :  { %v2261_v24 = vpop.eup %2260 }
  0x11   :  { %v2263_v25 = vpop.eup %2262  ;;  %v69_v26 = vadd.f32 1.0, %v2261_v24  ;;  %v72_v30 = vmul.f32 -0.5, %v2261_v24  ;;  %v75_v37 = vand.u32 2147483647, %v2261_v24 }
  0x12   :  { %v2265_v27 = vpop.eup %2264  ;;  %v51_v28 = vadd.f32 1.0, %v2263_v25  ;;  %v54_v33 = vmul.f32 -0.5, %v2263_v25  ;;  %v57_v41 = vand.u32 2147483647, %v2263_v25 }
  0x13   :  { %v2267_v29 = vpop.eup %2266  ;;  %2276 = vlog2.f32 %v69_v26  ;;  %v78_v31 = vadd.f32 1.0, %v2265_v27  ;;  %v81_v34 = vmul.f32 -0.5, %v2265_v27  ;;  %v73_v40 = vadd.f32 1.0, %v72_v30 }
  0x14   :  { %v2372_v32 = vpop.eup %2268  ;;  %2278 = vlog2.f32 %v51_v28  ;;  %v60_v35 = vadd.f32 1.0, %v2267_v29  ;;  %v63_v38 = vmul.f32 -0.5, %v2267_v29  ;;  %v55_v43 = vadd.f32 1.0, %v54_v33 }
  0x15   :  { %2280 = vlog2.f32 %v78_v31  ;;  %v2374_v36 = vpop.eup %2270  ;;  %v96_v42 = vadd.f32 1.0, %v2372_v32  ;;  %v82_v44 = vadd.f32 1.0, %v81_v34  ;;  %v84_v45 = vand.u32 2147483647, %v2265_v27 }
  0x16   :  { %v2377_v39 = vpop.eup %2272  ;;  %2282 = vlog2.f32 %v60_v35  ;;  %v66_v47 = vand.u32 2147483647, %v2267_v29  ;;  %v99_v48 = vmul.f32 -0.5, %v2372_v32  ;;  %v87_v49 = vadd.f32 1.0, %v2374_v36 }
  0x17   :  { %v2382_v46 = vpop.eup %2274  ;;  %2284 = vlog2.f32 %v96_v42  ;;  %vm2386_vm3 = vcmp.lt.f32.partialorder %v75_v37, 0.0004427343  ;;  %v64_v51 = vadd.f32 1.0, %v63_v38  ;;  %v114_v52 = vadd.f32 1.0, %v2377_v39 }
  0x18   :  { %v74_v53 = vmul.f32 %v2261_v24, %v73_v40  ;;  %vm2392_vm5 = vcmp.lt.f32.partialorder %v57_v41, 0.0004427343  ;;  %2286 = vlog2.f32 %v87_v49  ;;  %v90_v55 = vmul.f32 -0.5, %v2374_v36 }
  0x19   :  { %v56_v56 = vmul.f32 %v2263_v25, %v55_v43  ;;  %vm2397_vm6 = vcmp.lt.f32.partialorder %v84_v45, 0.0004427343  ;;  %2288 = vlog2.f32 %v114_v52  ;;  %v105_v58 = vadd.f32 1.0, %v2382_v46 }
  0x1a   :  { %v83_v60 = vmul.f32 %v2265_v27, %v82_v44  ;;  %vm2403_vm8 = vcmp.lt.f32.partialorder %v66_v47, 0.0004427343  ;;  %v100_v62 = vadd.f32 1.0, %v99_v48  ;;  %v117_v63 = vmul.f32 -0.5, %v2377_v39 }
  0x1b   :  { %v65_v7 = vmul.f32 %v2267_v29, %v64_v51  ;;  %v102_v8 = vand.u32 2147483647, %v2372_v32  ;;  %2290 = vlog2.f32 %v105_v58  ;;  %v91_v15 = vadd.f32 1.0, %v90_v55 }
  0x1c   :  { %v93_v16 = vand.u32 2147483647, %v2374_v36  ;;  %v108_v17 = vmul.f32 -0.5, %v2382_v46  ;;  %v101_v26 = vmul.f32 %v2372_v32, %v100_v62  ;;  %v118_v27 = vadd.f32 1.0, %v117_v63 }
  0x1d   :  { %v2277_v59 = vpop.eup %2276  ;;  %v120_v31 = vand.u32 2147483647, %v2377_v39  ;;  %vm2444_vm9 = vcmp.lt.f32.partialorder %v102_v8, 0.0004427343  ;;  %v2448_v37 = vpack.c.bf16 %v250_v22, %v247_v21  ;;  %v92_v41 = vmul.f32 %v2374_v36, %v91_v15 }
  0x1e   :  { %v2279_v3 = vpop.eup %2278  ;;  %v71_v4 = vmul.f32 0.6931472, %v2277_v59  ;;  %v109_v35 = vadd.f32 1.0, %v108_v17  ;;  %v111_v42 = vand.u32 2147483647, %v2382_v46  ;;  %v119_v47 = vmul.f32 %v2377_v39, %v118_v27 }
  0x1f   :  { %v2281_v13 = vpop.eup %2280  ;;  %v53_v14 = vmul.f32 0.6931472, %v2279_v3  ;;  %vm2459_vm10 = vcmp.lt.f32.partialorder %v93_v16, 0.0004427343  ;;  %2156 = vmatprep.subr.bf16.mxu1 %v2448_v37  ;;  %2132 = vmatprep.subr.bf16.mxu0 %v2448_v37  ;;  %vm2471_vm12 = vcmp.lt.f32.partialorder %v120_v31, 0.0004427343  ;;  %v395_v58 = vsub.f32 %v219_v11, %v247_v21 }
  0x20   :  { %v77_v18 = vsel %vm2386_vm3, %v74_v53, %v71_v4  ;;  %v80_v20 = vmul.f32 0.6931472, %v2281_v13  ;;  %v2283_v23 = vpop.eup %2282  ;;  %2158 = vmatpush3.bf16.msra.mxu1 %v2448_v37  ;;  %v110_v52 = vmul.f32 %v2382_v46, %v109_v35  ;;  %2134 = vmatpush3.bf16.msra.mxu0 %v2448_v37  ;;  %vm112_vm15 = vcmp.lt.f32.partialorder %v111_v42, 0.0004427343 }
  0x21   :  { %v2422_v24 = vsel %vm21_vm0, %v2327_v0, %v77_v18  ;;  %v59_v25 = vsel %vm2392_vm5, %v56_v56, %v53_v14  ;;  %v62_v30 = vmul.f32 0.6931472, %v2283_v23  ;;  %v2285_v33 = vpop.eup %2284  ;;  %v402_v46 = vsub.f32 %v220_v12, %v250_v22 }
  0x22   :  { %191 = vrot.lane.b32.xlu1 %v2422_v24, %s2308_s1  ;;  %v2432_v28 = vsel %vm19_vm1, %v2332_v1, %v59_v25  ;;  %v86_v29 = vsel %vm2397_vm6, %v83_v60, %v80_v20  ;;  %v98_v40 = vmul.f32 0.6931472, %v2285_v33  ;;  %v2287_v43 = vpop.eup %2286  ;;  %v396_v61 = vand.u32 4294901760, %v395_v58 }
  0x23   :  { %187 = vrot.lane.b32.xlu0 %v2432_v28, %s2308_s1  ;;  %v2442_v32 = vsel %vm22_vm2, %v2337_v2, %v86_v29  ;;  %v68_v38 = vsel %vm2403_vm8, %v65_v7, %v62_v30  ;;  %v2289_v48 = vpop.eup %2288  ;;  %v89_v49 = vmul.f32 0.6931472, %v2287_v43  ;;  %v403_v63 = vand.u32 4294901760, %v402_v46 }
  0x24   :  { %v2457_v44 = vsel %vm20_vm4, %v2344_v5, %v68_v38  ;;  %v104_v36 = vsel %vm2444_vm9, %v101_v26, %v98_v40  ;;  %v116_v51 = vmul.f32 0.6931472, %v2289_v48  ;;  %v397_v3 = vsub.f32 %v395_v58, %v396_v61 }
  0x25   :  { %v2481_v39 = vsel %vm24_vm7, %v2349_v6, %v104_v36  ;;  %v2291_v53 = vpop.eup %2290  ;;  %v95_v54 = vsel %vm2459_vm10, %v92_v41, %v89_v49  ;;  %v2508_v4 = vmul.f32 %v2457_v44, %v2344_v5  ;;  %v404_v7 = vsub.f32 %v402_v46, %v403_v63 }
  0x26   :  { %193 = vrot.lane.b32.xlu1 %v2442_v32, %s2308_s1  ;;  %v2490_v55 = vsel %vm23_vm11, %v2356_v9, %v95_v54  ;;  %v122_v56 = vsel %vm2471_vm12, %v119_v47, %v116_v51  ;;  %v107_v57 = vmul.f32 0.6931472, %v2291_v53  ;;  %v2514_v8 = vmul.f32 %v2432_v28, %v2332_v1 }
  0x27   :  { %189 = vrot.lane.b32.xlu0 %v2457_v44, %s2308_s1  ;;  %v2499_v59 = vsel %vm26_vm13, %v2361_v10, %v122_v56  ;;  %v398_v11 = vand.u32 4294901760, %v397_v3  ;;  %v405_v12 = vand.u32 4294901760, %v404_v7  ;;  %v2520_v13 = vmul.f32 %v2442_v32, %v2337_v2 }
  0x28   :  { %v113_v60 = vsel %vm112_vm15, %v110_v52, %v107_v57  ;;  %v2528_v5 = vmul.f32 %v2422_v24, %v2327_v0  ;;  %v2536_v1 = vmul.f32 %v2481_v39, %v2349_v6  ;;  %v2542_v2 = vmul.f32 %v2490_v55, %v2356_v9 }
  0x29   :  { %v2502_v62 = vsel %vm25_vm14, %v2369_v19, %v113_v60  ;;  %v2522_v14 = vpack.c.bf16 %v405_v12, %v398_v11  ;;  %v2544_v0 = vpack.c.bf16 %v402_v46, %v395_v58  ;;  %v2550_v15 = vmul.f32 %v2499_v59, %v2361_v10 }
  0x2a   :  { %197 = vrot.lane.b32.xlu1 %v2481_v39, %s2308_s1  ;;  %v2556_v6 = vmul.f32 %v2502_v62, %v2369_v19  ;;  %v2562_v9 = vpack.c.bf16 %v403_v63, %v396_v61  ;;  %vm221_vm0 = vcmask 130048   ;;  %vm1806_vm1 = vcmask 64512  }
  0x2b   :  { %195 = vrot.lane.b32.xlu0 %v2490_v55, %s2308_s1  ;;  %2160 = vmatprep.subr.bf16.mxu1 %v2522_v14 }
  0x2c   :  { %2136 = vmatprep.subr.bf16.mxu0 %v2522_v14 }
  0x2e   :  { %201 = vrot.lane.b32.xlu1 %v2499_v59, %s2308_s1 }
  0x2f   :  { %199 = vrot.lane.b32.xlu0 %v2502_v62, %s2308_s1 }
  0x32   :  { %149 = vrot.lane.b32.xlu1 %v2508_v4, %s2308_s1 }
  0x33   :  { %147 = vrot.lane.b32.xlu0 %v2514_v8, %s2308_s1 }
  0x36   :  { %153 = vrot.lane.b32.xlu1 %v2520_v13, %s2308_s1 }
  0x37   :  { %151 = vrot.lane.b32.xlu0 %v2528_v5, %s2308_s1 }
  0x3a   :  { %157 = vrot.lane.b32.xlu1 %v2536_v1, %s2308_s1 }
  0x3b   :  { %155 = vrot.lane.b32.xlu0 %v2542_v2, %s2308_s1 }
  0x3e   :  { %161 = vrot.lane.b32.xlu1 %v2550_v15, %s2308_s1 }
  0x3f   :  { %159 = vrot.lane.b32.xlu0 %v2556_v6, %s2308_s1 }
  0x94   :  { %v192_v16 = vpop.permute.xlu1 %191 }
  0x95   :  { %v213_v10 = vadd.f32 %v192_v16, %v2422_v24  ;;  %v188_v17 = vpop.permute.xlu0 %187 }
  0x96   :  { %v211_v18 = vadd.f32 %v188_v17, %v2432_v28 }
  0x97   :  { %v1013_v20 = vsel %vm221_vm0, %v213_v10, 0 }
  0x98   :  { %v2567_v21 = vand.u32 4294901760, %v1013_v20  ;;  %v1007_v19 = vsel %vm221_vm0, %v211_v18, 0  ;;  %v194_v22 = vpop.permute.xlu1 %193 }
  0x99   :  { %v2570_v23 = vand.u32 4294901760, %v1007_v19  ;;  %v214_v25 = vadd.f32 %v194_v22, %v2442_v32  ;;  %v190_v26 = vpop.permute.xlu0 %189 }
  0x9a   :  { %v2574_v27 = vsub.f32 %v1013_v20, %v2567_v21  ;;  %v212_v24 = vadd.f32 %v190_v26, %v2457_v44 }
  0x9b   :  { %v2578_v29 = vsub.f32 %v1007_v19, %v2570_v23  ;;  %v1016_v28 = vsel %vm221_vm0, %v214_v25, 0 }
  0x9c   :  { %v2581_v30 = vand.u32 4294901760, %v1016_v28  ;;  %v1010_v31 = vsel %vm221_vm0, %v212_v24, 0  ;;  %v198_v33 = vpop.permute.xlu1 %197  ;;  %v1119_v42 = vand.u32 4294901760, %v2574_v27 }
  0x9d   :  { %v2584_v34 = vand.u32 4294901760, %v1010_v31  ;;  %v216_v32 = vadd.f32 %v198_v33, %v2481_v39  ;;  %v196_v35 = vpop.permute.xlu0 %195  ;;  %v1099_v38 = vand.u32 4294901760, %v2578_v29 }
  0x9e   :  { %v2589_v40 = vsub.f32 %v1016_v28, %v2581_v30  ;;  %v215_v41 = vadd.f32 %v196_v35, %v2490_v55  ;;  %v1120_v56 = vsub.f32 %v2574_v27, %v1119_v42 }
  0x9f   :  { %v2594_v43 = vsub.f32 %v1010_v31, %v2584_v34  ;;  %v1022_v44 = vsel %vm221_vm0, %v216_v32, 0  ;;  %v1100_v45 = vsub.f32 %v2578_v29, %v1099_v38 }
  0xa0   :  { %v2600_v47 = vand.u32 4294901760, %v1022_v44  ;;  %v1019_v48 = vsel %vm221_vm0, %v215_v41, 0  ;;  %v202_v36 = vpop.permute.xlu1 %201  ;;  %v1129_v49 = vand.u32 4294901760, %v2589_v40  ;;  %v1121_v18 = vand.u32 4294901760, %v1120_v56 }
  0xa1   :  { %v2604_v50 = vand.u32 4294901760, %v1019_v48  ;;  %v218_v39 = vadd.f32 %v202_v36, %v2499_v59  ;;  %v200_v51 = vpop.permute.xlu0 %199  ;;  %v1101_v52 = vand.u32 4294901760, %v1100_v45  ;;  %v1109_v53 = vand.u32 4294901760, %v2594_v43 }
  0xa2   :  { %v2609_v54 = vsub.f32 %v1022_v44, %v2600_v47  ;;  %v217_v55 = vadd.f32 %v200_v51, %v2502_v62  ;;  %v1130_v59 = vsub.f32 %v2589_v40, %v1129_v49 }
  0xa3   :  { %v2616_v57 = vsub.f32 %v1019_v48, %v2604_v50  ;;  %v1028_v58 = vsel %vm221_vm0, %v218_v39, 0  ;;  %2039 = vmatprep.mubr.f32.mxu1 %v1101_v52  ;;  %v1110_v46 = vsub.f32 %v2594_v43, %v1109_v53 }
  0xa4   :  { %v2625_v60 = vand.u32 4294901760, %v1028_v58  ;;  %v1025_v61 = vsel %vm221_vm0, %v217_v55, 0  ;;  %v150_v62 = vpop.permute.xlu1 %149  ;;  %v1149_v63 = vand.u32 4294901760, %v2609_v54  ;;  %v1131_v22 = vand.u32 4294901760, %v1130_v59 }
  0xa5   :  { %v2629_v3 = vand.u32 4294901760, %v1025_v61  ;;  %v172_v7 = vadd.f32 %v150_v62, %v2508_v4  ;;  %v148_v11 = vpop.permute.xlu0 %147  ;;  %v1111_v12 = vand.u32 4294901760, %v1110_v46  ;;  %v1139_v16 = vand.u32 4294901760, %v2616_v57 }
  0xa6   :  { %v2634_v10 = vsub.f32 %v1028_v58, %v2625_v60  ;;  %v171_v17 = vadd.f32 %v148_v11, %v2514_v8  ;;  %v1150_v8 = vsub.f32 %v2609_v54, %v1149_v63 }
  0xa7   :  { %v2638_v20 = vsub.f32 %v1025_v61, %v2629_v3  ;;  %v226_v19 = vsel %vm221_vm0, %v172_v7, 0  ;;  %2040 = vmatmul.mubr.f32.vlgmr.msra.gmra.mrb[0].mxu1 %v1111_v12  ;;  %v1140_v4 = vsub.f32 %v2616_v57, %v1139_v16 }
  0xa8   :  { %v2644_v25 = vand.u32 4294901760, %v226_v19  ;;  %v223_v26 = vsel %vm221_vm0, %v171_v17, 0  ;;  %2042 = vmatprep.mubr.f32.mxu1 %v1121_v18  ;;  %v154_v24 = vpop.permute.xlu1 %153  ;;  %2162 = vmatpush3.bf16.msra.mxu1 %v2522_v14  ;;  %v1169_v28 = vand.u32 4294901760, %v2634_v10  ;;  %v1151_v55 = vand.u32 4294901760, %v1150_v8 }
  0xa9   :  { %v2652_v31 = vand.u32 4294901760, %v223_v26  ;;  %v174_v33 = vadd.f32 %v154_v24, %v2520_v13  ;;  %v152_v32 = vpop.permute.xlu0 %151  ;;  %v1141_v35 = vand.u32 4294901760, %v1140_v4  ;;  %v1159_v41 = vand.u32 4294901760, %v2638_v20  ;;  %2164 = vmatprep.subr.bf16.mxu1 %v2544_v0 }
  0xaa   :  { %v2658_v44 = vsub.f32 %v226_v19, %v2644_v25  ;;  %v173_v45 = vadd.f32 %v152_v32, %v2528_v5  ;;  %v1170_v39 = vsub.f32 %v2634_v10, %v1169_v28 }
  0xab   :  { %v2662_v48 = vsub.f32 %v223_v26, %v2652_v31  ;;  %v232_v36 = vsel %vm221_vm0, %v174_v33, 0  ;;  %2043 = vmatmul.mubr.f32.gmra.mrb[2].mxu1 %v1131_v22  ;;  %v1160_v13 = vsub.f32 %v2638_v20, %v1159_v41 }
  0xac   :  { %v2671_v51 = vand.u32 4294901760, %v232_v36  ;;  %v229_v52 = vsel %vm221_vm0, %v173_v45, 0  ;;  %2045 = vmatprep.mubr.f32.mxu1 %v1141_v35  ;;  %v158_v5 = vpop.permute.xlu1 %157  ;;  %v325_v56 = vand.u32 4294901760, %v2658_v44  ;;  %v1171_v19 = vand.u32 4294901760, %v1170_v39 }
  0xad   :  { %v2675_v58 = vand.u32 4294901760, %v229_v52  ;;  %v176_v46 = vadd.f32 %v158_v5, %v2536_v1  ;;  %v156_v59 = vpop.permute.xlu0 %155  ;;  %v1161_v61 = vand.u32 4294901760, %v1160_v13  ;;  %v315_v62 = vand.u32 4294901760, %v2662_v48 }
  0xae   :  { %v2680_v7 = vsub.f32 %v232_v36, %v2671_v51  ;;  %v175_v11 = vadd.f32 %v156_v59, %v2542_v2  ;;  %v326_v12 = vsub.f32 %v2658_v44, %v325_v56 }
  0xaf   :  { %v2687_v17 = vsub.f32 %v229_v52, %v2675_v58  ;;  %v238_v18 = vsel %vm221_vm0, %v176_v46, 0  ;;  %2046 = vmatmul.mubr.f32.gmra.mrb[4].mxu1 %v1151_v55  ;;  %v316_v1 = vsub.f32 %v2662_v48, %v315_v62 }
  0xb0   :  { %v2693_v22 = vand.u32 4294901760, %v238_v18  ;;  %v235_v4 = vsel %vm221_vm0, %v175_v11, 0  ;;  %2048 = vmatprep.mubr.f32.mxu1 %v1161_v61  ;;  %v162_v2 = vpop.permute.xlu1 %161  ;;  %v327_v26 = vand.u32 4294901760, %v326_v12  ;;  %v345_v24 = vand.u32 4294901760, %v2680_v7 }
  0xb1   :  { %v2697_v8 = vand.u32 4294901760, %v235_v4  ;;  %v178_v33 = vadd.f32 %v162_v2, %v2550_v15  ;;  %v160_v32 = vpop.permute.xlu0 %159  ;;  %v317_v35 = vand.u32 4294901760, %v316_v1  ;;  %v335_v45 = vand.u32 4294901760, %v2687_v17 }
  0xb2   :  { %v2702_v36 = vsub.f32 %v238_v18, %v2693_v22  ;;  %v177_v13 = vadd.f32 %v160_v32, %v2556_v6  ;;  %v346_v39 = vsub.f32 %v2680_v7, %v345_v24 }
  0xb3   :  { %v2709_v52 = vsub.f32 %v235_v4, %v2697_v8  ;;  %v244_v5 = vsel %vm221_vm0, %v178_v33, 0  ;;  %1943 = vmatprep.mubr.f32.mxu0 %v317_v35  ;;  %2049 = vmatmul.mubr.f32.gmra.mrb[6].mxu1 %v1171_v19  ;;  %v336_v15 = vsub.f32 %v2687_v17, %v335_v45 }
  0xb4   :  { %v2715_v55 = vand.u32 4294901760, %v244_v5  ;;  %v241_v46 = vsel %vm221_vm0, %v177_v13, 0  ;;  %1944 = vmatmul.mubr.f32.vlgmr.msra.gmra.mrb[0].mxu0 %v327_v26  ;;  %2055 = vmatprep.mubr.f32.mxu1 %v2570_v23  ;;  %v347_v6 = vand.u32 4294901760, %v346_v39  ;;  %v365_v59 = vand.u32 4294901760, %v2702_v36 }
  0xb5   :  { %v2720_v61 = vand.u32 4294901760, %v241_v46  ;;  %2138 = vmatpush3.bf16.msra.mxu0 %v2522_v14  ;;  %v337_v11 = vand.u32 4294901760, %v336_v15  ;;  %v355_v12 = vand.u32 4294901760, %v2709_v52 }
  0xb6   :  { %v2725_v18 = vsub.f32 %v244_v5, %v2715_v55  ;;  %v366_v1 = vsub.f32 %v2702_v36, %v365_v59  ;;  %2140 = vmatprep.subr.bf16.mxu0 %v2544_v0 }
  0xb7   :  { %v2732_v19 = vsub.f32 %v241_v46, %v2720_v61  ;;  %1946 = vmatprep.mubr.f32.mxu0 %v337_v11  ;;  %2056 = vmatmul.mubr.f32.vlgmr.msra.gmra.mrb[0].mxu1 %v2584_v34  ;;  %v356_v14 = vsub.f32 %v2709_v52, %v355_v12 }
  0xb8   :  { %1947 = vmatmul.mubr.f32.gmra.mrb[2].mxu0 %v347_v6  ;;  %2058 = vmatprep.mubr.f32.mxu1 %v2567_v21  ;;  %v367_v4 = vand.u32 4294901760, %v366_v1  ;;  %v385_v2 = vand.u32 4294901760, %v2725_v18 }
  0xb9   :  { %2166 = vmatpush3.bf16.msra.mxu1 %v2544_v0  ;;  %v357_v26 = vand.u32 4294901760, %v356_v14  ;;  %v375_v33 = vand.u32 4294901760, %v2732_v19 }
  0xba   :  { %v386_v32 = vsub.f32 %v2725_v18, %v385_v2  ;;  %2168 = vmatprep.subr.bf16.mxu1 %v2448_v37 }
  0xbb   :  { %1949 = vmatprep.mubr.f32.mxu0 %v357_v26  ;;  %2059 = vmatmul.mubr.f32.gmra.mrb[2].mxu1 %v2581_v30  ;;  %v376_v35 = vsub.f32 %v2732_v19, %v375_v33 }
  0xbc   :  { %1950 = vmatmul.mubr.f32.gmra.mrb[4].mxu0 %v367_v4  ;;  %2061 = vmatprep.mubr.f32.mxu1 %v2604_v50  ;;  %v387_v13 = vand.u32 4294901760, %v386_v32 }
  0xbd   :  { %v377_v39 = vand.u32 4294901760, %v376_v35 }
  0xbf   :  { %1952 = vmatprep.mubr.f32.mxu0 %v377_v39  ;;  %2062 = vmatmul.mubr.f32.gmra.mrb[4].mxu1 %v2600_v47 }
  0xc0   :  { %1953 = vmatmul.mubr.f32.gmra.mrb[6].mxu0 %v387_v13  ;;  %2064 = vmatprep.mubr.f32.mxu1 %v2629_v3 }
  0xc1   :  { %1959 = vmatprep.mubr.f32.mxu0 %v2652_v31 }
  0xc3   :  { %2065 = vmatmul.mubr.f32.gmra.mrb[6].mxu1 %v2625_v60 }
  0xc4   :  { %1960 = vmatmul.mubr.f32.vlgmr.msra.gmra.mrb[0].mxu0 %v2644_v25  ;;  %2071 = vmatprep.mubr.f32.mxu1 %v2578_v29 }
  0xc5   :  { %2142 = vmatpush3.bf16.msra.mxu0 %v2544_v0  ;;  %1962 = vmatprep.mubr.f32.mxu0 %v2675_v58 }
  0xc6   :  { %2144 = vmatprep.subr.bf16.mxu0 %v2448_v37 }
  0xc7   :  { %2072 = vmatmul.mubr.f32.vlgmr.msra.gmra.mrb[0].mxu1 %v2594_v43 }
  0xc8   :  { %1963 = vmatmul.mubr.f32.gmra.mrb[2].mxu0 %v2671_v51  ;;  %2074 = vmatprep.mubr.f32.mxu1 %v2574_v27 }
  0xc9   :  { %1965 = vmatprep.mubr.f32.mxu0 %v2697_v8  ;;  %2170 = vmatpush3.bf16.msra.mxu1 %v2448_v37 }
  0xca   :  { %2172 = vmatprep.subr.bf16.mxu1 %v2562_v9 }
  0xcb   :  { %2075 = vmatmul.mubr.f32.gmra.mrb[2].mxu1 %v2589_v40 }
  0xcc   :  { %1966 = vmatmul.mubr.f32.gmra.mrb[4].mxu0 %v2693_v22  ;;  %2077 = vmatprep.mubr.f32.mxu1 %v2616_v57 }
  0xcd   :  { %1968 = vmatprep.mubr.f32.mxu0 %v2720_v61 }
  0xcf   :  { %2078 = vmatmul.mubr.f32.gmra.mrb[4].mxu1 %v2609_v54 }
  0xd0   :  { %1969 = vmatmul.mubr.f32.gmra.mrb[6].mxu0 %v2715_v55  ;;  %2080 = vmatprep.mubr.f32.mxu1 %v2638_v20 }
  0xd1   :  { %1975 = vmatprep.mubr.f32.mxu0 %v2662_v48 }
  0xd3   :  { %2081 = vmatmul.mubr.f32.gmra.mrb[6].mxu1 %v2634_v10 }
  0xd4   :  { %1976 = vmatmul.mubr.f32.vlgmr.msra.gmra.mrb[0].mxu0 %v2658_v44  ;;  %2087 = vmatprep.mubr.f32.mxu1 %v1099_v38 }
  0xd5   :  { %2146 = vmatpush3.bf16.msra.mxu0 %v2448_v37  ;;  %1978 = vmatprep.mubr.f32.mxu0 %v2687_v17 }
  0xd6   :  { %2148 = vmatprep.subr.bf16.mxu0 %v2562_v9 }
  0xd7   :  { %2088 = vmatmul.mubr.f32.vlgmr.msra.gmra.mrb[0].mxu1 %v1109_v53 }
  0xd8   :  { %1979 = vmatmul.mubr.f32.gmra.mrb[2].mxu0 %v2680_v7  ;;  %2090 = vmatprep.mubr.f32.mxu1 %v1119_v42 }
  0xd9   :  { %1981 = vmatprep.mubr.f32.mxu0 %v2709_v52  ;;  %2174 = vmatpush3.bf16.msra.mxu1 %v2562_v9 }
  0xda   :  { %2176 = vmatprep.subr.bf16.mxu1 %v2448_v37 }
  0xdb   :  { %2091 = vmatmul.mubr.f32.gmra.mrb[2].mxu1 %v1129_v49 }
  0xdc   :  { %1982 = vmatmul.mubr.f32.gmra.mrb[4].mxu0 %v2702_v36  ;;  %2093 = vmatprep.mubr.f32.mxu1 %v1139_v16 }
  0xdd   :  { %1984 = vmatprep.mubr.f32.mxu0 %v2732_v19 }
  0xdf   :  { %2094 = vmatmul.mubr.f32.gmra.mrb[4].mxu1 %v1149_v63 }
  0xe0   :  { %1985 = vmatmul.mubr.f32.gmra.mrb[6].mxu0 %v2725_v18  ;;  %2096 = vmatprep.mubr.f32.mxu1 %v1159_v41 }
  0xe1   :  { %1991 = vmatprep.mubr.f32.mxu0 %v315_v62 }
  0xe3   :  { %2097 = vmatmul.mubr.f32.gmra.mrb[6].mxu1 %v1169_v28 }
  0xe4   :  { %1992 = vmatmul.mubr.f32.vlgmr.msra.gmra.mrb[0].mxu0 %v325_v56  ;;  %2103 = vmatprep.mubr.f32.mxu1 %v2570_v23 }
  0xe5   :  { %2150 = vmatpush3.bf16.msra.mxu0 %v2562_v9  ;;  %1994 = vmatprep.mubr.f32.mxu0 %v335_v45 }
  0xe6   :  { %2152 = vmatprep.subr.bf16.mxu0 %v2448_v37 }
  0xe7   :  { %2104 = vmatmul.mubr.f32.vlgmr.msra.gmra.mrb[0].mxu1 %v2584_v34 }
  0xe8   :  { %1995 = vmatmul.mubr.f32.gmra.mrb[2].mxu0 %v345_v24  ;;  %2106 = vmatprep.mubr.f32.mxu1 %v2567_v21 }
  0xe9   :  { %1997 = vmatprep.mubr.f32.mxu0 %v355_v12  ;;  %2178 = vmatpush3.bf16.msra.mxu1 %v2448_v37 }
  0xeb   :  { %2107 = vmatmul.mubr.f32.gmra.mrb[2].mxu1 %v2581_v30 }
  0xec   :  { %1998 = vmatmul.mubr.f32.gmra.mrb[4].mxu0 %v365_v59  ;;  %2109 = vmatprep.mubr.f32.mxu1 %v2604_v50 }
  0xed   :  { %2000 = vmatprep.mubr.f32.mxu0 %v375_v33 }
  0xef   :  { %2110 = vmatmul.mubr.f32.gmra.mrb[4].mxu1 %v2600_v47 }
  0xf0   :  { %2001 = vmatmul.mubr.f32.gmra.mrb[6].mxu0 %v385_v2  ;;  %2112 = vmatprep.mubr.f32.mxu1 %v2629_v3 }
  0xf1   :  { %2007 = vmatprep.mubr.f32.mxu0 %v2652_v31 }
  0xf3   :  { %2113 = vmatmul.mubr.f32.gmra.mrb[6].mxu1 %v2625_v60 }
  0xf4   :  { %2008 = vmatmul.mubr.f32.vlgmr.msra.gmra.mrb[0].mxu0 %v2644_v25  ;;  %2119 = vmatprep.mubr.f32.mxu1 %v2570_v23 }
  0xf5   :  { %2154 = vmatpush3.bf16.msra.mxu0 %v2448_v37  ;;  %2010 = vmatprep.mubr.f32.mxu0 %v2675_v58 }
  0xf7   :  { %2120 = vmatmul.mubr.f32.vlgmr.msra.gmra.mrb[0].mxu1 %v2584_v34 }
  0xf8   :  { %2011 = vmatmul.mubr.f32.gmra.mrb[2].mxu0 %v2671_v51  ;;  %2122 = vmatprep.mubr.f32.mxu1 %v2567_v21 }
  0xf9   :  { %2013 = vmatprep.mubr.f32.mxu0 %v2697_v8 }
  0xfb   :  { %2123 = vmatmul.mubr.f32.gmra.mrb[2].mxu1 %v2581_v30 }
  0xfc   :  { %2014 = vmatmul.mubr.f32.gmra.mrb[4].mxu0 %v2693_v22  ;;  %2125 = vmatprep.mubr.f32.mxu1 %v2604_v50 }
  0xfd   :  { %2016 = vmatprep.mubr.f32.mxu0 %v2720_v61 }
  0xff   :  { %2126 = vmatmul.mubr.f32.gmra.mrb[4].mxu1 %v2600_v47 }
 0x100   :  { %2017 = vmatmul.mubr.f32.gmra.mrb[6].mxu0 %v2715_v55  ;;  %2128 = vmatprep.mubr.f32.mxu1 %v2629_v3 }
 0x101   :  { %2023 = vmatprep.mubr.f32.mxu0 %v2652_v31 }
 0x103   :  { %2129 = vmatmul.mubr.f32.gmra.mrb[6].mxu1 %v2625_v60 }
 0x104   :  { %2024 = vmatmul.mubr.f32.vlgmr.msra.gmra.mrb[0].mxu0 %v2644_v25 }
 0x105   :  { %2026 = vmatprep.mubr.f32.mxu0 %v2675_v58 }
 0x108   :  { %2027 = vmatmul.mubr.f32.gmra.mrb[2].mxu0 %v2671_v51 }
 0x109   :  { %2029 = vmatprep.mubr.f32.mxu0 %v2697_v8 }
 0x10c   :  { %2030 = vmatmul.mubr.f32.gmra.mrb[4].mxu0 %v2693_v22 }
 0x10d   :  { %2032 = vmatprep.mubr.f32.mxu0 %v2720_v61 }
 0x110   :  { %2033 = vmatmul.mubr.f32.gmra.mrb[6].mxu0 %v2715_v55 }
 0x1ca   :  { %v2121_v37 = vpop.f32.mrb[0].mxu1 }
 0x1cb   :  { %v1744_v0 = vpop.f32.mrb[1].mxu1  ;;  %2292 = vrcp.f32 %v2121_v37 }
 0x1cc   :  { %2294 = vrcp.f32 %v1744_v0 }
 0x1ce   :  { %v2124_v9 = vpop.f32.mrb[2].mxu1 }
 0x1cf   :  { %v1756_v21 = vpop.f32.mrb[3].mxu1  ;;  %2296 = vrcp.f32 %v2124_v9 }
 0x1d0   :  { %2298 = vrcp.f32 %v1756_v21 }
 0x1d2   :  { %v2127_v23 = vpop.f32.mrb[4].mxu1 }
 0x1d3   :  { %v1768_v27 = vpop.f32.mrb[5].mxu1  ;;  %2300 = vrcp.f32 %v2127_v23 }
 0x1d4   :  { %2302 = vrcp.f32 %v1768_v27 }
 0x1d5   :  { %v2293_v30 = vpop.eup %2292 }
 0x1d6   :  { %v2130_v29 = vpop.f32.mrb[6].mxu1  ;;  %v2295_v40 = vpop.eup %2294 }
 0x1d7   :  { %v2025_v34 = vpop.f32.mrb[0].mxu0  ;;  %v1780_v38 = vpop.f32.mrb[7].mxu1  ;;  %2304 = vrcp.f32 %v2130_v29 }
 0x1d8   :  { %v1793_v42 = vmul.f32 %v2293_v30, %v2025_v34  ;;  %v960_v43 = vpop.f32.mrb[1].mxu0  ;;  %2306 = vrcp.f32 %v1780_v38 }
 0x1d9   :  { %v1791_v47 = vmul.f32 %v2295_v40, %v960_v43  ;;  %v2297_v49 = vpop.eup %2296 }
 0x1da   :  { %1808 = vst.msk [vmem:[%s2888_s2 + $0x8] sm:$0xff] %vm1806_vm1, %v1793_v42  ;;  %v2299_v53 = vpop.eup %2298 }
 0x1db   :  { %1807 = vst.msk [vmem:[%s2888_s2] sm:$0xff] %vm1806_vm1, %v1791_v47  ;;  %v2028_v50 = vpop.f32.mrb[2].mxu0 }
 0x1dc   :  { %v1797_v54 = vmul.f32 %v2297_v49, %v2028_v50  ;;  %v972_v57 = vpop.f32.mrb[3].mxu0 }
 0x1dd   :  { %v1795_v60 = vmul.f32 %v2299_v53, %v972_v57  ;;  %v2301_v63 = vpop.eup %2300 }
 0x1de   :  { %1810 = vst.msk [vmem:[%s2888_s2 + $0x18] sm:$0xff] %vm1806_vm1, %v1797_v54  ;;  %v2303_v16 = vpop.eup %2302 }
 0x1df   :  { %1809 = vst.msk [vmem:[%s2888_s2 + $0x10] sm:$0xff] %vm1806_vm1, %v1795_v60  ;;  %v2031_v3 = vpop.f32.mrb[4].mxu0 }
 0x1e0   :  { %v1801_v10 = vmul.f32 %v2301_v63, %v2031_v3  ;;  %v984_v20 = vpop.f32.mrb[5].mxu0 }
 0x1e1   :  { %v1799_v25 = vmul.f32 %v2303_v16, %v984_v20  ;;  %v2305_v28 = vpop.eup %2304 }
 0x1e2   :  { %1812 = vst.msk [vmem:[%s2888_s2 + $0x28] sm:$0xff] %vm1806_vm1, %v1801_v10  ;;  %v2307_v41 = vpop.eup %2306 }
 0x1e3   :  { %1811 = vst.msk [vmem:[%s2888_s2 + $0x20] sm:$0xff] %vm1806_vm1, %v1799_v25  ;;  %v2034_v31 = vpop.f32.mrb[6].mxu0 }
 0x1e4   :  { %v1805_v44 = vmul.f32 %v2305_v28, %v2034_v31  ;;  %v996_v48 = vpop.f32.mrb[7].mxu0 }
 0x1e5   :  { %v1803_v51 = vmul.f32 %v2307_v41, %v996_v48 }
 0x1e6   :  { %1814 = vst.msk [vmem:[%s2888_s2 + $0x38] sm:$0xff] %vm1806_vm1, %v1805_v44 }
 0x1e7   :  { %1813 = vst.msk [vmem:[%s2888_s2 + $0x30] sm:$0xff] %vm1806_vm1, %v1803_v51 }

</bundles_post_ra>
